<compile_context>
chip_gen: v5e
topology: v5e:2x2
jax: 0.10.0
libtpu: 0.0.40
codegen_flags: <defaults>
</compile_context>

<pallas_src>
import functools
import math

import jax
import jax.numpy as jnp
from jax import lax
from jax.experimental import pallas as pl
from jax.experimental.pallas import tpu as pltpu

_INV_SQRT_2 = 1.0 / math.sqrt(2.0)
_INV_SQRT_2PI = 1.0 / math.sqrt(2.0 * math.pi)
_EPS = 1e-8   # f32-meaningful floor (1e-12 is below useful f32 resolution here)


def _round_up(x, m):
    return ((x + m - 1) // m) * m


def _policy_kernel(inp_ref, p1_ref, p2_hbm_ref, out_ref, p2_vmem, dma_sem, *,
                   d_in_pad, hidden, d_out_pad):
    # ---- overlap: start fc2 weight-slab DMA before any fc1 compute ----------
    p2_copy = pltpu.make_async_copy(p2_hbm_ref, p2_vmem, dma_sem)
    p2_copy.start()

    # ---- input: one lane-packed row [mu (+bias lane) | var | var+mu^2] ------
    mu_in = inp_ref[:, :d_in_pad]          # (1, d_in_pad), carries 1.0 bias lane
    lhs1 = inp_ref[:, d_in_pad:]           # (1, 2*d_in_pad) = [var | var+mu^2]

    # ---- fc1 packed slab: [W1(+b1 row) ; W1^2 ; S1] --------------------------
    w1 = p1_ref[0:d_in_pad, :]             # (d_in_pad, H), b1 folded into row d_in
    vs1 = p1_ref[d_in_pad:, :]             # (2*d_in_pad, H) = [W1^2 ; S1]

    mu_z = jnp.dot(mu_in, w1, preferred_element_type=jnp.float32)
    var_z = jnp.dot(lhs1, vs1, preferred_element_type=jnp.float32)

    # ---- Gaussian ReLU moment matching (hidden activation) -------------------
    inv_sd = lax.rsqrt(var_z + _EPS)
    sd = (var_z + _EPS) * inv_sd
    alpha = mu_z * inv_sd
    cdf = 0.5 * (1.0 + lax.erf(alpha * _INV_SQRT_2))
    pdf = _INV_SQRT_2PI * jnp.exp(-0.5 * alpha * alpha)
    mu_h = sd * pdf + mu_z * cdf
    # Algebraically identical to (mu_z^2+var_z)*cdf + mu_z*sd*pdf - mu_h^2
    var_h = jnp.maximum(mu_z * mu_h + var_z * cdf - mu_h * mu_h, 0.0)

    # ---- fc2 packed slab: [W2 ; W2^2 ; S2 ; b2 (+pad rows)] ------------------
    p2_copy.wait()
    w2 = p2_vmem[0:hidden, :]                          # (H, d_out_pad)
    vs2 = p2_vmem[hidden:3 * hidden, :]                # (2H, d_out_pad) = [W2^2 ; S2]
    b2 = p2_vmem[3 * hidden:3 * hidden + 1, :]         # (1, d_out_pad)

    mu_out = jnp.dot(mu_h, w2, preferred_element_type=jnp.float32) + b2
    lhs2 = jnp.concatenate([var_h, var_h + mu_h * mu_h], axis=1)  # (1, 2H)
    var_out = jnp.dot(lhs2, vs2, preferred_element_type=jnp.float32)

    # two aligned, unmasked 128-lane stores: [mu_pad | var_pad]
    out_ref[:, :d_out_pad] = mu_out
    out_ref[:, d_out_pad:] = var_out


def pack_params(params):
    """Pack raw params into two contiguous f32 slabs (W^2 precomputed, b1 folded)."""
    w1, s1, b1 = params["w1"], params["s1"], params["b1"]
    w2, s2, b2 = params["w2"], params["s2"], params["b2"]
    d_in, hidden = w1.shape
    d_out = w2.shape[1]
    d_in_pad = _round_up(d_in + 1, 128)     # spare padded row hosts the folded b1
    d_out_pad = _round_up(d_out, 128)

    w1p = jnp.zeros((d_in_pad, hidden), jnp.float32).at[:d_in].set(w1)
    sq1 = w1p * w1p                          # squared BEFORE folding the bias
    s1p = jnp.zeros((d_in_pad, hidden), jnp.float32).at[:d_in].set(s1)
    w1p = w1p.at[d_in].set(b1.reshape(hidden).astype(jnp.float32))   # bias fold
    p1 = jnp.concatenate([w1p, sq1, s1p], axis=0)                    # (3*d_in_pad, H)

    w2p = jnp.zeros((hidden, d_out_pad), jnp.float32).at[:, :d_out].set(w2)
    s2p = jnp.zeros((hidden, d_out_pad), jnp.float32).at[:, :d_out].set(s2)
    b2p = jnp.zeros((8, d_out_pad), jnp.float32).at[0, :d_out].set(
        b2.reshape(d_out).astype(jnp.float32))                       # 8 rows: sublane-aligned
    p2 = jnp.concatenate([w2p, w2p * w2p, s2p, b2p], axis=0)         # (3*H+8, d_out_pad)

    meta = dict(d_in=int(d_in), d_in_pad=int(d_in_pad), hidden=int(hidden),
                d_out=int(d_out), d_out_pad=int(d_out_pad))
    return p1, p2, meta


@functools.partial(jax.jit,
                   static_argnames=("d_in", "d_in_pad", "hidden", "d_out", "d_out_pad"))
def _forward_jit(inp_mean, inp_var, p1, p2, *, d_in, d_in_pad, hidden, d_out, d_out_pad):
    mu = inp_mean.reshape(-1).astype(jnp.float32)
    var = inp_var.reshape(-1).astype(jnp.float32)
    # single lane-aligned input row: [mu (+1.0 bias lane) | var | var+mu^2]
    inp = jnp.zeros((1, 3 * d_in_pad), jnp.float32)
    inp = inp.at[0, :d_in].set(mu)
    inp = inp.at[0, d_in].set(1.0)                                   # bias indicator
    inp = inp.at[0, d_in_pad:d_in_pad + d_in].set(var)
    inp = inp.at[0, 2 * d_in_pad:2 * d_in_pad + d_in].set(var + mu * mu)

    kernel = functools.partial(_policy_kernel, d_in_pad=d_in_pad, hidden=hidden,
                               d_out_pad=d_out_pad)
    vmem = pl.BlockSpec(memory_space=pltpu.MemorySpace.VMEM)
    hbm = pl.BlockSpec(memory_space=pl.ANY)   # p2 stays in HBM; kernel DMAs it itself
    out = pl.pallas_call(
        kernel,
        out_shape=jax.ShapeDtypeStruct((1, 2 * d_out_pad), jnp.float32),
        in_specs=[vmem, vmem, hbm],
        out_specs=vmem,
        scratch_shapes=[pltpu.VMEM((3 * hidden + 8, d_out_pad), jnp.float32),
                        pltpu.SemaphoreType.DMA(())],
    )(inp, p1, p2)

    mu_pred = out[0, :d_out]
    var_pred = out[0, d_out_pad:d_out_pad + d_out]
    return mu_pred, var_pred


def policy_net_forward(inp_mean, inp_var, p1, p2, meta):
    """PolicyNet.forward: flattens inputs (view(-1)) and returns 1-D (mu, var)."""
    return _forward_jit(inp_mean, inp_var, p1, p2, **meta)


def _reference_forward(inp_mean, inp_var, params):
    """Plain-JAX reference implementing the same math (unpacked params)."""
    mu = inp_mean.reshape(1, -1).astype(jnp.float32)
    var = inp_var.reshape(1, -1).astype(jnp.float32)
    w1, s1, b1 = params["w1"], params["s1"], params["b1"]
    w2, s2, b2 = params["w2"], params["s2"], params["b2"]
    mu_z = mu @ w1 + b1
    var_z = var @ (w1 * w1) + (var + mu * mu) @ s1
    sd = jnp.sqrt(var_z + _EPS)
    alpha = mu_z / sd
    cdf = 0.5 * (1.0 + lax.erf(alpha * _INV_SQRT_2))
    pdf = _INV_SQRT_2PI * jnp.exp(-0.5 * alpha * alpha)
    mu_h = sd * pdf + mu_z * cdf
    var_h = jnp.maximum((mu_z * mu_z + var_z) * cdf + mu_z * sd * pdf - mu_h * mu_h, 0.0)
    mu_p = mu_h @ w2 + b2
    var_p = var_h @ (w2 * w2) + (var_h + mu_h * mu_h) @ s2
    return mu_p.reshape(-1), var_p.reshape(-1)


def init_params(key, n_points, hidden=256):
    d_in = 10 * n_points
    k1, k2, k3, k4 = jax.random.split(key, 4)
    w1 = 0.1 * jax.random.normal(k1, (d_in, hidden), dtype=jnp.float32)
    s1 = jnp.exp(-6.0 + 0.1 * jax.random.normal(k2, (d_in, hidden), dtype=jnp.float32))
    b1 = jnp.zeros((1, hidden), dtype=jnp.float32)
    w2 = 0.1 * jax.random.normal(k3, (hidden, n_points), dtype=jnp.float32)
    s2 = jnp.exp(-6.0 + 0.1 * jax.random.normal(k4, (hidden, n_points), dtype=jnp.float32))
    b2 = jnp.zeros((1, n_points), dtype=jnp.float32)
    return {"w1": w1, "s1": s1, "b1": b1, "w2": w2, "s2": s2, "b2": b2}


if __name__ == "__main__":
    n_points = 8                      # D_in = 10 * n_points = 80, hidden = 256
    key = jax.random.PRNGKey(0)
    kp, km, kv = jax.random.split(key, 3)

    params = init_params(kp, n_points)
    p1, p2, meta = pack_params(params)          # done once; reused every call

    # Inputs mimic the original call: per-point feature mean/variance, later
    # flattened with view(-1).
    inp_mean = jax.random.normal(km, (10, n_points), dtype=jnp.float32)
    inp_var = 0.1 + jax.nn.softplus(jax.random.normal(kv, (10, n_points),
                                                      dtype=jnp.float32))

    mu_pred, var_pred = policy_net_forward(inp_mean, inp_var, p1, p2, meta)
    jax.block_until_ready((mu_pred, var_pred))

    mu_ref, var_ref = _reference_forward(inp_mean, inp_var, params)
    assert mu_pred.shape == (n_points,) and var_pred.shape == (n_points,)
    assert jnp.allclose(mu_pred, mu_ref, rtol=1e-4, atol=1e-4)
    assert jnp.allclose(var_pred, var_ref, rtol=1e-4, atol=1e-4)

    print("KERNEL_OK")
</pallas_src>

<mosaic_0001>
module attributes {stable_mosaic.version = 11 : i64} {
  func.func @_policy_kernel(%arg0: memref<1x384xf32, #tpu.memory_space<vmem>>, %arg1: memref<384x256xf32, #tpu.memory_space<vmem>>, %arg2: memref<776x128xf32, #tpu.memory_space<any>>, %arg3: memref<1x256xf32, #tpu.memory_space<vmem>>, %arg4: memref<776x128xf32, #tpu.memory_space<vmem>>, %arg5: memref<!tpu.dma_semaphore, #tpu.memory_space<semaphore_mem>>) attributes {dimension_semantics = [], scalar_prefetch = 0 : i64, scratch_operands = 2 : i64, tpu.core_type = #tpu.core_type<tc>} {
    tpu.enqueue_dma source(%arg2 : memref<776x128xf32, #tpu.memory_space<any>>) target(%arg4 : memref<776x128xf32, #tpu.memory_space<vmem>>) target_semaphore(%arg5 : memref<!tpu.dma_semaphore, #tpu.memory_space<semaphore_mem>>)
    %c0 = arith.constant 0 : index
    %c0_0 = arith.constant 0 : index
    %0 = vector.load %arg0[%c0, %c0_0] : memref<1x384xf32, #tpu.memory_space<vmem>>, vector<1x128xf32>
    %c0_1 = arith.constant 0 : index
    %c128 = arith.constant 128 : index
    %1 = vector.load %arg0[%c0_1, %c128] : memref<1x384xf32, #tpu.memory_space<vmem>>, vector<1x256xf32>
    %c0_2 = arith.constant 0 : index
    %c0_3 = arith.constant 0 : index
    %2 = vector.load %arg1[%c0_2, %c0_3] : memref<384x256xf32, #tpu.memory_space<vmem>>, vector<128x256xf32>
    %c128_4 = arith.constant 128 : index
    %c0_5 = arith.constant 0 : index
    %3 = vector.load %arg1[%c128_4, %c0_5] : memref<384x256xf32, #tpu.memory_space<vmem>>, vector<256x256xf32>
    %cst = arith.constant dense<0.000000e+00> : vector<1x256xf32>
    %4 = tpu.matmul %0, %2, %cst {dimension_numbers = #tpu.dot_dimension_numbers<[1], [0], [0], [1], [0, 0, 1, 1], [], []>} : vector<1x128xf32>, vector<128x256xf32>, vector<1x256xf32> -> vector<1x256xf32>
    %cst_6 = arith.constant dense<0.000000e+00> : vector<1x256xf32>
    %5 = tpu.matmul %1, %3, %cst_6 {dimension_numbers = #tpu.dot_dimension_numbers<[1], [0], [0], [1], [0, 0, 1, 1], [], []>} : vector<1x256xf32>, vector<256x256xf32>, vector<1x256xf32> -> vector<1x256xf32>
    %cst_7 = arith.constant 9.99999993E-9 : f32
    %6 = vector.broadcast %cst_7 : f32 to vector<1x256xf32>
    %7 = arith.addf %5, %6 : vector<1x256xf32>
    %8 = math.rsqrt %7 : vector<1x256xf32>
    %cst_8 = arith.constant 9.99999993E-9 : f32
    %9 = vector.broadcast %cst_8 : f32 to vector<1x256xf32>
    %10 = arith.addf %5, %9 : vector<1x256xf32>
    %11 = arith.mulf %10, %8 : vector<1x256xf32>
    %12 = arith.mulf %4, %8 : vector<1x256xf32>
    %cst_9 = arith.constant 0.707106769 : f32
    %13 = vector.broadcast %cst_9 : f32 to vector<1x256xf32>
    %14 = arith.mulf %12, %13 : vector<1x256xf32>
    %15 = math.erf %14 : vector<1x256xf32>
    %cst_10 = arith.constant 1.000000e+00 : f32
    %16 = vector.broadcast %cst_10 : f32 to vector<1x256xf32>
    %17 = arith.addf %16, %15 : vector<1x256xf32>
    %cst_11 = arith.constant 5.000000e-01 : f32
    %18 = vector.broadcast %cst_11 : f32 to vector<1x256xf32>
    %19 = arith.mulf %18, %17 : vector<1x256xf32>
    %cst_12 = arith.constant -5.000000e-01 : f32
    %20 = vector.broadcast %cst_12 : f32 to vector<1x256xf32>
    %21 = arith.mulf %20, %12 : vector<1x256xf32>
    %22 = arith.mulf %21, %12 : vector<1x256xf32>
    %23 = math.exp %22 : vector<1x256xf32>
    %cst_13 = arith.constant 0.398942292 : f32
    %24 = vector.broadcast %cst_13 : f32 to vector<1x256xf32>
    %25 = arith.mulf %24, %23 : vector<1x256xf32>
    %26 = arith.mulf %11, %25 : vector<1x256xf32>
    %27 = arith.mulf %4, %19 : vector<1x256xf32>
    %28 = arith.addf %26, %27 : vector<1x256xf32>
    %29 = arith.mulf %4, %28 : vector<1x256xf32>
    %30 = arith.mulf %5, %19 : vector<1x256xf32>
    %31 = arith.addf %29, %30 : vector<1x256xf32>
    %32 = arith.mulf %28, %28 : vector<1x256xf32>
    %33 = arith.subf %31, %32 : vector<1x256xf32>
    %cst_14 = arith.constant 0.000000e+00 : f32
    %34 = vector.broadcast %cst_14 : f32 to vector<1x256xf32>
    %35 = arith.maximumf %33, %34 : vector<1x256xf32>
    tpu.wait_dma2 semaphore(%arg5 : memref<!tpu.dma_semaphore, #tpu.memory_space<semaphore_mem>>) src(%arg2 : memref<776x128xf32, #tpu.memory_space<any>>) dst(%arg4 : memref<776x128xf32, #tpu.memory_space<vmem>>)
    %c0_15 = arith.constant 0 : index
    %c0_16 = arith.constant 0 : index
    %36 = vector.load %arg4[%c0_15, %c0_16] : memref<776x128xf32, #tpu.memory_space<vmem>>, vector<256x128xf32>
    %c256 = arith.constant 256 : index
    %c0_17 = arith.constant 0 : index
    %37 = vector.load %arg4[%c256, %c0_17] : memref<776x128xf32, #tpu.memory_space<vmem>>, vector<512x128xf32>
    %c768 = arith.constant 768 : index
    %c0_18 = arith.constant 0 : index
    %38 = vector.load %arg4[%c768, %c0_18] : memref<776x128xf32, #tpu.memory_space<vmem>>, vector<1x128xf32>
    %cst_19 = arith.constant dense<0.000000e+00> : vector<1x128xf32>
    %39 = tpu.matmul %28, %36, %cst_19 {dimension_numbers = #tpu.dot_dimension_numbers<[1], [0], [0], [1], [0, 0, 1, 1], [], []>} : vector<1x256xf32>, vector<256x128xf32>, vector<1x128xf32> -> vector<1x128xf32>
    %40 = arith.addf %39, %38 : vector<1x128xf32>
    %41 = arith.mulf %28, %28 : vector<1x256xf32>
    %42 = arith.addf %35, %41 : vector<1x256xf32>
    %43 = tpu.concatenate %35, %42 in 1 : vector<1x256xf32>, vector<1x256xf32> -> vector<1x512xf32>
    %cst_20 = arith.constant dense<0.000000e+00> : vector<1x128xf32>
    %44 = tpu.matmul %43, %37, %cst_20 {dimension_numbers = #tpu.dot_dimension_numbers<[1], [0], [0], [1], [0, 0, 1, 1], [], []>} : vector<1x512xf32>, vector<512x128xf32>, vector<1x128xf32> -> vector<1x128xf32>
    %c0_21 = arith.constant 0 : index
    %c0_22 = arith.constant 0 : index
    %45 = vector.load %arg3[%c0_21, %c0_22] : memref<1x256xf32, #tpu.memory_space<vmem>>, vector<1x128xf32>
    tpu.vector_store %arg3[%c0_21, %c0_22], %40 {strides = array<i32>} : memref<1x256xf32, #tpu.memory_space<vmem>>, vector<1x128xf32>,
    %c0_23 = arith.constant 0 : index
    %c128_24 = arith.constant 128 : index
    %46 = vector.load %arg3[%c0_23, %c128_24] : memref<1x256xf32, #tpu.memory_space<vmem>>, vector<1x128xf32>
    tpu.vector_store %arg3[%c0_23, %c128_24], %44 {strides = array<i32>} : memref<1x256xf32, #tpu.memory_space<vmem>>, vector<1x128xf32>,
    return
  }
}

</mosaic_0001>

<bundles_post_ra>
// kernel: _forward_jit.1
= control target key start
LH: loop header
LB: loop body
LE: loop exit
PB: predicated region body
PF: predicated region fallthrough
CT: control target
= control target key end

     0   :  { %8 = vsyncpa [#allocation5], 0  ;;  %s714_s15 = smov [#allocation4]   ;;  %s715_s17 = smov 256   ;;  %s844_s0 = inlined_call_operand.vmem [shape: f32[1,384], index: 0, kind: input, shape index: {}]   ;;  %s845_s1 = inlined_call_operand.hbm [shape: f32[384,256], index: 1, kind: input, shape index: {}]   ;;  %s846_s2 = inlined_call_operand.hbm [shape: f32[776,128], index: 2, kind: input, shape index: {}]   ;;  %s847_s3 = inlined_call_operand.vmem [shape: f32[1,256], index: 3, kind: output, shape index: {}]  }
   0x1   :  { %s15_s14 = sshll.u32 %s845_s1, 4  ;;  %s17_s16 = sshll.u32 %s714_s15, 4  ;;  %s16_s14 = int_to_ptr.hbm [resolvable:$true] %s15_s14  ;;  %s18_s16 = int_to_ptr.vmem [resolvable:$true] %s17_s16 }
   0x2   :  { %s716_s18 = smov 16  }
   0x3   :  { %23 = dma.hbm_to_vmem [thread:$0]  %s16_s14, 12288, %s18_s16, [#allocation5], %s715_s17, %s715_s17, %s716_s18  }
   0x4   :  { %710 = dma.done.wait [#allocation5], 12288  }
   0x5   :  { %711 = vsyncadd [#allocation5], 4294955008  ;;  %v73_v0 = vld [vmem:[#allocation4 + $0xf0] sm:$0xff]  ;;  %v74_v1 = vld [vmem:[#allocation4 + $0xf8] sm:$0xff]  ;;  %s35_s23 = sshll.u32 %s846_s2, 4  ;;  %s717_s24 = smov [#allocation2]   ;;  %s36_s23 = int_to_ptr.hbm [resolvable:$true] %s35_s23 }
   0x6   :  { %v105_v2 = vld [vmem:[#allocation4 + $0x1f0] sm:$0xff]  ;;  %139 = vmatpush.msra.mxu0 %v73_v0  ;;  %159 = vmatpush.msra.mxu1 %v74_v1  ;;  %v71_v4 = vld [vmem:[#allocation4 + $0xe0] sm:$0xff]  ;;  %v72_v5 = vld [vmem:[#allocation4 + $0xe8] sm:$0xff]  ;;  %s37_s25 = sshll.u32 %s717_s24, 4  ;;  %s38_s25 = int_to_ptr.vmem [resolvable:$true] %s37_s25 }
   0x7   :  { %v137_v3 = vld [vmem:[#allocation4 + $0x2f0] sm:$0xff]  ;;  %184 = vmatpush.msra.mxu2 %v105_v2  ;;  %v103_v6 = vld [vmem:[#allocation4 + $0x1e0] sm:$0xff]  ;;  %v70_v9 = vld [vmem:[#allocation4 + $0xd8] sm:$0xff]  ;;  %40 = dma.hbm_to_vmem [thread:$0]  %s36_s23, 12416, %s38_s25, [#allocation3] }
   0x8   :  { %204 = vmatpush.msra.mxu3 %v137_v3  ;;  %v135_v7 = vld [vmem:[#allocation4 + $0x2e0] sm:$0xff]  ;;  %v69_v8 = vld [vmem:[#allocation4 + $0xd0] sm:$0xff]  ;;  %140 = vmatpush.msra.mxu0 %v71_v4  ;;  %v68_v13 = vld [vmem:[#allocation4 + $0xc8] sm:$0xff] }
   0x9   :  { %160 = vmatpush.msra.mxu1 %v72_v5  ;;  %v101_v10 = vld [vmem:[#allocation4 + $0x1d0] sm:$0xff]  ;;  %185 = vmatpush.msra.mxu2 %v103_v6  ;;  %v67_v12 = vld [vmem:[#allocation4 + $0xc0] sm:$0xff]  ;;  %v66_v17 = vld [vmem:[#allocation4 + $0xb8] sm:$0xff] }
   0xa   :  { %v133_v11 = vld [vmem:[#allocation4 + $0x2d0] sm:$0xff]  ;;  %205 = vmatpush.msra.mxu3 %v135_v7  ;;  %141 = vmatpush.msra.mxu0 %v69_v8  ;;  %v99_v14 = vld [vmem:[#allocation4 + $0x1c0] sm:$0xff]  ;;  %v64_v21 = vld [vmem:[#allocation4 + $0xa8] sm:$0xff] }
   0xb   :  { %161 = vmatpush.msra.mxu1 %v70_v9  ;;  %v131_v15 = vld [vmem:[#allocation4 + $0x2c0] sm:$0xff]  ;;  %186 = vmatpush.msra.mxu2 %v101_v10  ;;  %v65_v16 = vld [vmem:[#allocation4 + $0xb0] sm:$0xff]  ;;  %v62_v25 = vld [vmem:[#allocation4 + $0x98] sm:$0xff] }
   0xc   :  { %206 = vmatpush.msra.mxu3 %v133_v11  ;;  %142 = vmatpush.msra.mxu0 %v67_v12  ;;  %v97_v18 = vld [vmem:[#allocation4 + $0x1b0] sm:$0xff]  ;;  %v63_v20 = vld [vmem:[#allocation4 + $0xa0] sm:$0xff]  ;;  %v60_v29 = vld [vmem:[#allocation4 + $0x88] sm:$0xff] }
   0xd   :  { %162 = vmatpush.msra.mxu1 %v68_v13  ;;  %v129_v19 = vld [vmem:[#allocation4 + $0x2b0] sm:$0xff]  ;;  %187 = vmatpush.msra.mxu2 %v99_v14  ;;  %v95_v22 = vld [vmem:[#allocation4 + $0x1a0] sm:$0xff]  ;;  %v58_v33 = vld [vmem:[#allocation4 + $0x78] sm:$0xff] }
   0xe   :  { %207 = vmatpush.msra.mxu3 %v131_v15  ;;  %143 = vmatpush.msra.mxu0 %v65_v16  ;;  %v127_v23 = vld [vmem:[#allocation4 + $0x2a0] sm:$0xff]  ;;  %v61_v24 = vld [vmem:[#allocation4 + $0x90] sm:$0xff]  ;;  %v56_v37 = vld [vmem:[#allocation4 + $0x68] sm:$0xff] }
   0xf   :  { %163 = vmatpush.msra.mxu1 %v66_v17  ;;  %188 = vmatpush.msra.mxu2 %v97_v18  ;;  %v93_v26 = vld [vmem:[#allocation4 + $0x190] sm:$0xff]  ;;  %v59_v28 = vld [vmem:[#allocation4 + $0x80] sm:$0xff]  ;;  %v54_v41 = vld [vmem:[#allocation4 + $0x58] sm:$0xff] }
  0x10   :  { %208 = vmatpush.msra.mxu3 %v129_v19  ;;  %144 = vmatpush.msra.mxu0 %v63_v20  ;;  %v125_v27 = vld [vmem:[#allocation4 + $0x290] sm:$0xff]  ;;  %v91_v30 = vld [vmem:[#allocation4 + $0x180] sm:$0xff]  ;;  %v52_v45 = vld [vmem:[#allocation4 + $0x48] sm:$0xff] }
  0x11   :  { %164 = vmatpush.msra.mxu1 %v64_v21  ;;  %189 = vmatpush.msra.mxu2 %v95_v22  ;;  %v123_v31 = vld [vmem:[#allocation4 + $0x280] sm:$0xff]  ;;  %v57_v32 = vld [vmem:[#allocation4 + $0x70] sm:$0xff]  ;;  %v50_v49 = vld [vmem:[#allocation4 + $0x38] sm:$0xff] }
  0x12   :  { %209 = vmatpush.msra.mxu3 %v127_v23  ;;  %145 = vmatpush.msra.mxu0 %v61_v24  ;;  %v89_v34 = vld [vmem:[#allocation4 + $0x170] sm:$0xff]  ;;  %v55_v36 = vld [vmem:[#allocation4 + $0x60] sm:$0xff]  ;;  %v48_v53 = vld [vmem:[#allocation4 + $0x28] sm:$0xff] }
  0x13   :  { %165 = vmatpush.msra.mxu1 %v62_v25  ;;  %190 = vmatpush.msra.mxu2 %v93_v26  ;;  %v121_v35 = vld [vmem:[#allocation4 + $0x270] sm:$0xff]  ;;  %v87_v38 = vld [vmem:[#allocation4 + $0x160] sm:$0xff]  ;;  %v46_v57 = vld [vmem:[#allocation4 + $0x18] sm:$0xff] }
  0x14   :  { %210 = vmatpush.msra.mxu3 %v125_v27  ;;  %146 = vmatpush.msra.mxu0 %v59_v28  ;;  %v119_v39 = vld [vmem:[#allocation4 + $0x260] sm:$0xff]  ;;  %v53_v40 = vld [vmem:[#allocation4 + $0x50] sm:$0xff]  ;;  %v744_v58 = vld [vmem:[%s844_s0 + $0x1] sm:$0x3] }
  0x15   :  { %166 = vmatpush.msra.mxu1 %v60_v29  ;;  %191 = vmatpush.msra.mxu2 %v91_v30  ;;  %v85_v42 = vld [vmem:[#allocation4 + $0x150] sm:$0xff]  ;;  %v51_v44 = vld [vmem:[#allocation4 + $0x40] sm:$0xff]  ;;  %v44_v62 = vld [vmem:[#allocation4 + $0x8] sm:$0xff]  ;;  %v180_v1 = vperm.slane %v744_v58, 0  ;;  %v181_v2 = vperm.slane %v744_v58, 1 }
  0x16   :  { %211 = vmatpush.msra.mxu3 %v123_v31  ;;  %147 = vmatpush.msra.mxu0 %v57_v32  ;;  %v117_v43 = vld [vmem:[#allocation4 + $0x250] sm:$0xff]  ;;  %v83_v46 = vld [vmem:[#allocation4 + $0x140] sm:$0xff]  ;;  %v106_v3 = vld [vmem:[#allocation4 + $0x1f8] sm:$0xff] }
  0x17   :  { %167 = vmatpush.msra.mxu1 %v58_v33  ;;  %192 = vmatpush.msra.mxu2 %v89_v34  ;;  %v115_v47 = vld [vmem:[#allocation4 + $0x240] sm:$0xff]  ;;  %v49_v48 = vld [vmem:[#allocation4 + $0x30] sm:$0xff]  ;;  %v138_v4 = vld [vmem:[#allocation4 + $0x2f8] sm:$0xff] }
  0x18   :  { %212 = vmatpush.msra.mxu3 %v121_v35  ;;  %148 = vmatpush.msra.mxu0 %v55_v36  ;;  %v81_v50 = vld [vmem:[#allocation4 + $0x130] sm:$0xff]  ;;  %v47_v52 = vld [vmem:[#allocation4 + $0x20] sm:$0xff]  ;;  %v41_v5 = vld [vmem:[%s844_s0] sm:$0x1] }
  0x19   :  { %168 = vmatpush.msra.mxu1 %v56_v37  ;;  %193 = vmatpush.msra.mxu2 %v87_v38  ;;  %v113_v51 = vld [vmem:[#allocation4 + $0x230] sm:$0xff]  ;;  %v79_v54 = vld [vmem:[#allocation4 + $0x120] sm:$0xff]  ;;  %v104_v6 = vld [vmem:[#allocation4 + $0x1e8] sm:$0xff] }
  0x1a   :  { %213 = vmatpush.msra.mxu3 %v119_v39  ;;  %149 = vmatpush.msra.mxu0 %v53_v40  ;;  %v111_v55 = vld [vmem:[#allocation4 + $0x220] sm:$0xff]  ;;  %v45_v56 = vld [vmem:[#allocation4 + $0x10] sm:$0xff]  ;;  %v136_v7 = vld [vmem:[#allocation4 + $0x2e8] sm:$0xff] }
  0x1b   :  { %169 = vmatpush.msra.mxu1 %v54_v41  ;;  %194 = vmatpush.msra.mxu2 %v85_v42  ;;  %v77_v59 = vld [vmem:[#allocation4 + $0x110] sm:$0xff]  ;;  %v43_v61 = vld [vmem:[#allocation4] sm:$0xff]  ;;  %v102_v8 = vld [vmem:[#allocation4 + $0x1d8] sm:$0xff] }
  0x1c   :  { %214 = vmatpush.msra.mxu3 %v117_v43  ;;  %150 = vmatpush.msra.mxu0 %v51_v44  ;;  %v109_v60 = vld [vmem:[#allocation4 + $0x210] sm:$0xff]  ;;  %v75_v63 = vld [vmem:[#allocation4 + $0x100] sm:$0xff]  ;;  %v134_v9 = vld [vmem:[#allocation4 + $0x2d8] sm:$0xff] }
  0x1d   :  { %170 = vmatpush.msra.mxu1 %v52_v45  ;;  %195 = vmatpush.msra.mxu2 %v83_v46  ;;  %v107_v0 = vld [vmem:[#allocation4 + $0x200] sm:$0xff]  ;;  %v100_v10 = vld [vmem:[#allocation4 + $0x1c8] sm:$0xff]  ;;  %v98_v12 = vld [vmem:[#allocation4 + $0x1b8] sm:$0xff] }
  0x1e   :  { %215 = vmatpush.msra.mxu3 %v115_v47  ;;  %151 = vmatpush.msra.mxu0 %v49_v48  ;;  %v132_v11 = vld [vmem:[#allocation4 + $0x2c8] sm:$0xff]  ;;  %v130_v13 = vld [vmem:[#allocation4 + $0x2b8] sm:$0xff] }
  0x1f   :  { %171 = vmatpush.msra.mxu1 %v50_v49  ;;  %196 = vmatpush.msra.mxu2 %v81_v50  ;;  %v96_v14 = vld [vmem:[#allocation4 + $0x1a8] sm:$0xff]  ;;  %v94_v16 = vld [vmem:[#allocation4 + $0x198] sm:$0xff] }
  0x20   :  { %216 = vmatpush.msra.mxu3 %v113_v51  ;;  %152 = vmatpush.msra.mxu0 %v47_v52  ;;  %v128_v15 = vld [vmem:[#allocation4 + $0x2a8] sm:$0xff]  ;;  %v126_v17 = vld [vmem:[#allocation4 + $0x298] sm:$0xff] }
  0x21   :  { %172 = vmatpush.msra.mxu1 %v48_v53  ;;  %197 = vmatpush.msra.mxu2 %v79_v54  ;;  %v92_v18 = vld [vmem:[#allocation4 + $0x188] sm:$0xff]  ;;  %v90_v20 = vld [vmem:[#allocation4 + $0x178] sm:$0xff] }
  0x22   :  { %217 = vmatpush.msra.mxu3 %v111_v55  ;;  %153 = vmatpush.msra.mxu0 %v45_v56  ;;  %v124_v19 = vld [vmem:[#allocation4 + $0x288] sm:$0xff]  ;;  %v122_v21 = vld [vmem:[#allocation4 + $0x278] sm:$0xff] }
  0x23   :  { %173 = vmatpush.msra.mxu1 %v46_v57  ;;  %198 = vmatpush.msra.mxu2 %v77_v59  ;;  %v88_v22 = vld [vmem:[#allocation4 + $0x168] sm:$0xff]  ;;  %v86_v24 = vld [vmem:[#allocation4 + $0x158] sm:$0xff] }
  0x24   :  { %218 = vmatpush.msra.mxu3 %v109_v60  ;;  %154 = vmatpush.msra.mxu0 %v43_v61  ;;  %v120_v23 = vld [vmem:[#allocation4 + $0x268] sm:$0xff]  ;;  %v118_v25 = vld [vmem:[#allocation4 + $0x258] sm:$0xff] }
  0x25   :  { %174 = vmatpush.msra.mxu1 %v44_v62  ;;  %199 = vmatpush.msra.mxu2 %v75_v63  ;;  %v84_v26 = vld [vmem:[#allocation4 + $0x148] sm:$0xff]  ;;  %v82_v28 = vld [vmem:[#allocation4 + $0x138] sm:$0xff] }
  0x26   :  { %219 = vmatpush.msra.mxu3 %v107_v0  ;;  %200 = vmatmul.f32.vlgmr.msra.gmra.mxu2 %v180_v1  ;;  %v116_v27 = vld [vmem:[#allocation4 + $0x248] sm:$0xff]  ;;  %v114_v29 = vld [vmem:[#allocation4 + $0x238] sm:$0xff] }
  0x27   :  { %220 = vmatmul.f32.vlgmr.msra.gmra.mxu3 %v181_v2  ;;  %224 = vmatpush.msrb.mxu0 %v106_v3  ;;  %v80_v30 = vld [vmem:[#allocation4 + $0x128] sm:$0xff]  ;;  %v78_v32 = vld [vmem:[#allocation4 + $0x118] sm:$0xff] }
  0x28   :  { %244 = vmatpush.msrb.mxu1 %v138_v4  ;;  %155 = vmatmul.f32.vlgmr.msra.gmra.mxu0 %v41_v5  ;;  %v112_v31 = vld [vmem:[#allocation4 + $0x228] sm:$0xff]  ;;  %v110_v33 = vld [vmem:[#allocation4 + $0x218] sm:$0xff] }
  0x29   :  { %175 = vmatmul.f32.vlgmr.msra.gmra.mxu1 %v41_v5  ;;  %225 = vmatpush.msrb.mxu0 %v104_v6  ;;  %v76_v34 = vld [vmem:[#allocation4 + $0x108] sm:$0xff] }
  0x2a   :  { %245 = vmatpush.msrb.mxu1 %v136_v7  ;;  %v108_v35 = vld [vmem:[#allocation4 + $0x208] sm:$0xff] }
  0x2b   :  { %226 = vmatpush.msrb.mxu0 %v102_v8 }
  0x2c   :  { %246 = vmatpush.msrb.mxu1 %v134_v9 }
  0x2d   :  { %227 = vmatpush.msrb.mxu0 %v100_v10 }
  0x2e   :  { %247 = vmatpush.msrb.mxu1 %v132_v11 }
  0x2f   :  { %228 = vmatpush.msrb.mxu0 %v98_v12 }
  0x30   :  { %248 = vmatpush.msrb.mxu1 %v130_v13 }
  0x31   :  { %229 = vmatpush.msrb.mxu0 %v96_v14 }
  0x32   :  { %249 = vmatpush.msrb.mxu1 %v128_v15 }
  0x33   :  { %230 = vmatpush.msrb.mxu0 %v94_v16 }
  0x34   :  { %250 = vmatpush.msrb.mxu1 %v126_v17 }
  0x35   :  { %231 = vmatpush.msrb.mxu0 %v92_v18 }
  0x36   :  { %251 = vmatpush.msrb.mxu1 %v124_v19 }
  0x37   :  { %232 = vmatpush.msrb.mxu0 %v90_v20 }
  0x38   :  { %252 = vmatpush.msrb.mxu1 %v122_v21 }
  0x39   :  { %233 = vmatpush.msrb.mxu0 %v88_v22 }
  0x3a   :  { %253 = vmatpush.msrb.mxu1 %v120_v23 }
  0x3b   :  { %234 = vmatpush.msrb.mxu0 %v86_v24 }
  0x3c   :  { %254 = vmatpush.msrb.mxu1 %v118_v25 }
  0x3d   :  { %235 = vmatpush.msrb.mxu0 %v84_v26 }
  0x3e   :  { %255 = vmatpush.msrb.mxu1 %v116_v27 }
  0x3f   :  { %236 = vmatpush.msrb.mxu0 %v82_v28 }
  0x40   :  { %256 = vmatpush.msrb.mxu1 %v114_v29 }
  0x41   :  { %237 = vmatpush.msrb.mxu0 %v80_v30 }
  0x42   :  { %257 = vmatpush.msrb.mxu1 %v112_v31 }
  0x43   :  { %238 = vmatpush.msrb.mxu0 %v78_v32 }
  0x44   :  { %258 = vmatpush.msrb.mxu1 %v110_v33 }
  0x45   :  { %239 = vmatpush.msrb.mxu0 %v76_v34 }
  0x46   :  { %259 = vmatpush.msrb.mxu1 %v108_v35  ;;  %240 = vmatmul.f32.vlgmr.msrb.gmra.mxu0 %v180_v1 }
  0x47   :  { %260 = vmatmul.f32.vlgmr.msrb.gmra.mxu1 %v181_v2 }
  0xa5   :  { %v769_v43 = vpop.f32.mrf.mxu0 }
  0xa6   :  { %v772_v45 = vpop.f32.mrf.mxu1 }
  0xa9   :  { %v201_v36 = vpop.f32.mrf.mxu2 }
  0xaa   :  { %v221_v37 = vpop.f32.mrf.mxu3 }
  0xab   :  { %v762_v38 = vadd.f32 %v221_v37, %v201_v36 }
  0xad   :  { %v765_v39 = vadd.f32 1e-08, %v762_v38 }
  0xaf   :  { %650 = vrsqrt.f32 %v765_v39  ;;  %vm272_vm0 = vweird.f32 %v765_v39 }
  0xb5   :  { %v651_v40 = vpop.eup %650 }
  0xb6   :  { %v267_v41 = vmul.f32 %v651_v40, %v765_v39  ;;  %vm273_vm1 = vweird.f32 %v651_v40 }
  0xb7   :  { %vm274_vm2 = vmor %vm272_vm0, %vm273_vm1 }
  0xb8   :  { %v268_v42 = vmul.f32 %v651_v40, %v267_v41 }
  0xba   :  { %v269_v44 = vmul.f32 0.5, %v268_v42 }
  0xbc   :  { %v270_v46 = vsub.f32 1.5, %v269_v44 }
  0xbe   :  { %v271_v47 = vmul.f32 %v651_v40, %v270_v46 }
  0xc0   :  { %v774_v48 = vsel %vm274_vm2, %v651_v40, %v271_v47 }
  0xc1   :  { %v288_v49 = vmul.f32 %v774_v48, %v769_v43 }
  0xc3   :  { %v778_v50 = vmul.f32 0.70710677, %v288_v49  ;;  %v241_v51 = vpop.f32.mrf.mxu0  ;;  %v376_v18 = vmul.f32 -0.5, %v288_v49 }
  0xc4   :  { %v261_v52 = vpop.f32.mrf.mxu1 }
  0xc5   :  { %v292_v53 = vmul.f32 %v778_v50, %v778_v50  ;;  %v782_v54 = vadd.f32 %v261_v52, %v241_v51  ;;  %v378_v22 = vmul.f32 %v376_v18, %v288_v49 }
  0xc7   :  { %v293_v55 = vmin.f32 %v292_v53, 16.0  ;;  %v785_v56 = vadd.f32 1e-08, %v782_v54  ;;  %v380_v29 = vmul.f32 1.442695, %v378_v22 }
  0xc9   :  { %v294_v57 = vmul.f32 2.1237322e-06, %v293_v55  ;;  %v305_v58 = vmul.f32 3.8918573e-05, %v293_v55  ;;  %652 = vrsqrt.f32 %v785_v56  ;;  %vm282_vm4 = vweird.f32 %v785_v56 }
  0xcb   :  { %v295_v59 = vadd.f32 0.00028619796, %v294_v57  ;;  %v306_v60 = vadd.f32 0.001143296, %v305_v58 }
  0xcd   :  { %v296_v61 = vmul.f32 %v295_v59, %v293_v55  ;;  %v307_v62 = vmul.f32 %v306_v60, %v293_v55 }
  0xcf   :  { %v297_v63 = vadd.f32 0.0036580483, %v296_v61  ;;  %v308_v0 = vadd.f32 0.014752088, %v307_v62  ;;  %v653_v1 = vpop.eup %652 }
  0xd0   :  { %v277_v3 = vmul.f32 %v653_v1, %v785_v56  ;;  %vm283_vm3 = vweird.f32 %v653_v1 }
  0xd1   :  { %v309_v2 = vmul.f32 %v308_v0, %v293_v55  ;;  %v298_v4 = vmul.f32 %v297_v63, %v293_v55  ;;  %vm284_vm5 = vmor %vm282_vm4, %vm283_vm3 }
  0xd2   :  { %v278_v6 = vmul.f32 %v653_v1, %v277_v3 }
  0xd3   :  { %v310_v5 = vadd.f32 0.112945676, %v309_v2  ;;  %v299_v9 = vadd.f32 0.05243302, %v298_v4 }
  0xd4   :  { %v279_v8 = vmul.f32 0.5, %v278_v6 }
  0xd5   :  { %v311_v7 = vmul.f32 %v310_v5, %v293_v55  ;;  %v300_v14 = vmul.f32 %v299_v9, %v293_v55 }
  0xd6   :  { %v280_v11 = vsub.f32 1.5, %v279_v8 }
  0xd7   :  { %v312_v10 = vadd.f32 0.4994258, %v311_v7  ;;  %v301_v20 = vadd.f32 0.18741608, %v300_v14 }
  0xd8   :  { %v281_v13 = vmul.f32 %v653_v1, %v280_v11 }
  0xd9   :  { %v313_v12 = vmul.f32 %v312_v10, %v293_v55  ;;  %v302_v25 = vmul.f32 %v301_v20, %v293_v55 }
  0xda   :  { %v790_v16 = vsel %vm284_vm5, %v653_v1, %v281_v13  ;;  %v286_v1 = vmul.f32 %v774_v48, %v765_v39 }
  0xdb   :  { %v314_v15 = vadd.f32 1.0, %v313_v12  ;;  %v289_v17 = vmul.f32 %v790_v16, %v772_v45  ;;  %v303_v33 = vadd.f32 1.1283791, %v302_v25 }
  0xdd   :  { %654 = vrcp.f32 %v314_v15  ;;  %v794_v19 = vmul.f32 0.70710677, %v289_v17  ;;  %v324_v34 = vand.u32 2147483647, %v314_v15  ;;  %v326_v35 = vand.u32 2147483648, %v314_v15 }
  0xde   :  { %656 = vpow2.f32 %v380_v29  ;;  %vm320_vm7 = vweird.f32 %v314_v15  ;;  %v304_v47 = vmul.f32 %v303_v33, %v778_v50  ;;  %v377_v8 = vmul.f32 -0.5, %v289_v17 }
  0xdf   :  { %v332_v21 = vmul.f32 %v794_v19, %v794_v19  ;;  %v327_v44 = vor.u32 1.1754944e-38, %v326_v35  ;;  %vm325_vm9 = vcmp.eq.f32.partialorder %v324_v34, 8.507059e+37  ;;  %v287_v34 = vmul.f32 %v790_v16, %v785_v56 }
  0xe0   :  { %v379_v48 = vmul.f32 %v377_v8, %v289_v17 }
  0xe1   :  { %v333_v23 = vmin.f32 %v332_v21, 16.0 }
  0xe2   :  { %v382_v21 = vmul.f32 1.442695, %v379_v48 }
  0xe3   :  { %v655_v24 = vpop.eup %654  ;;  %v334_v27 = vmul.f32 2.1237322e-06, %v333_v23  ;;  %v345_v28 = vmul.f32 3.8918573e-05, %v333_v23 }
  0xe4   :  { %v316_v26 = vmul.f32 %v655_v24, %v314_v15  ;;  %vm321_vm6 = vweird.f32 %v655_v24  ;;  %v657_v57 = vpop.eup %656 }
  0xe5   :  { %v335_v31 = vadd.f32 0.00028619796, %v334_v27  ;;  %v346_v32 = vadd.f32 0.001143296, %v345_v28  ;;  %vm322_vm8 = vmor %vm320_vm7, %vm321_vm6  ;;  %v384_v62 = vmul.f32 0.3989423, %v657_v57 }
  0xe6   :  { %v317_v30 = vsub.f32 1.0, %v316_v26 }
  0xe7   :  { %v336_v37 = vmul.f32 %v335_v31, %v333_v23  ;;  %v347_v40 = vmul.f32 %v346_v32, %v333_v23  ;;  %v386_v50 = vmul.f32 %v384_v62, %v286_v1 }
  0xe8   :  { %v318_v36 = vmul.f32 %v655_v24, %v317_v30 }
  0xe9   :  { %v348_v42 = vadd.f32 0.014752088, %v347_v40  ;;  %v337_v46 = vadd.f32 0.0036580483, %v336_v37 }
  0xea   :  { %v319_v41 = vadd.f32 %v655_v24, %v318_v36 }
  0xeb   :  { %v349_v51 = vmul.f32 %v348_v42, %v333_v23  ;;  %v338_v58 = vmul.f32 %v337_v46, %v333_v23 }
  0xec   :  { %v323_v49 = vsel %vm322_vm8, %v655_v24, %v319_v41 }
  0xed   :  { %v328_v52 = vsel %vm325_vm9, %v327_v44, %v323_v49  ;;  %v350_v55 = vadd.f32 0.112945676, %v349_v51  ;;  %v339_v0 = vadd.f32 0.05243302, %v338_v58 }
  0xee   :  { %v329_v53 = vmul.f32 %v328_v52, %v304_v47 }
  0xef   :  { %v351_v60 = vmul.f32 %v350_v55, %v333_v23  ;;  %v340_v6 = vmul.f32 %v339_v0, %v333_v23 }
  0xf0   :  { %v643_v59 = vclamps-f32 %v329_v53, 1.0 }
  0xf1   :  { %v352_v63 = vadd.f32 0.4994258, %v351_v60  ;;  %v341_v11 = vadd.f32 0.18741608, %v340_v6 }
  0xf2   :  { %v372_v61 = vadd.f32 1.0, %v643_v59 }
  0xf3   :  { %v353_v3 = vmul.f32 %v352_v63, %v333_v23  ;;  %v342_v15 = vmul.f32 %v341_v11, %v333_v23 }
  0xf4   :  { %v374_v2 = vmul.f32 0.5, %v372_v61 }
  0xf5   :  { %v354_v5 = vadd.f32 1.0, %v353_v3 }
  0xf6   :  { %v388_v4 = vmul.f32 %v374_v2, %v769_v43  ;;  %v394_v10 = vmul.f32 %v374_v2, %v762_v38 }
  0xf7   :  { %658 = vrcp.f32 %v354_v5  ;;  %v366_v24 = vand.u32 2147483648, %v354_v5  ;;  %v364_v38 = vand.u32 2147483647, %v354_v5  ;;  %vm360_vm11 = vweird.f32 %v354_v5 }
  0xf8   :  { %v802_v7 = vadd.f32 %v388_v4, %v386_v50  ;;  %660 = vpow2.f32 %v382_v21 }
  0xf9   :  { %v367_v27 = vor.u32 1.1754944e-38, %v366_v24  ;;  %vm365_vm13 = vcmp.eq.f32.partialorder %v364_v38, 8.507059e+37 }
  0xfa   :  { %v392_v9 = vmul.f32 %v802_v7, %v769_v43  ;;  %v809_v39 = vmul.f32 %v802_v7, %v802_v7  ;;  %v343_v43 = vadd.f32 1.1283791, %v342_v15 }
  0xfc   :  { %v396_v12 = vadd.f32 %v394_v10, %v392_v9  ;;  %v344_v17 = vmul.f32 %v343_v43, %v794_v19 }
  0xfd   :  { %v659_v13 = vpop.eup %658 }
  0xfe   :  { %v400_v14 = vsub.f32 %v396_v12, %v809_v39  ;;  %v356_v18 = vmul.f32 %v659_v13, %v354_v5  ;;  %vm361_vm10 = vweird.f32 %v659_v13  ;;  %v661_v30 = vpop.eup %660 }
  0xff   :  { %vm362_vm12 = vmor %vm360_vm11, %vm361_vm10  ;;  %v385_v33 = vmul.f32 0.3989423, %v661_v30 }
 0x100   :  { %v812_v20 = vmax.f32 %v400_v14, 0.0  ;;  %v357_v22 = vsub.f32 1.0, %v356_v18 }
 0x101   :  { %v387_v36 = vmul.f32 %v385_v33, %v287_v34 }
 0x102   :  { %v358_v25 = vmul.f32 %v659_v13, %v357_v22 }
 0x104   :  { %v359_v26 = vadd.f32 %v659_v13, %v358_v25 }
 0x106   :  { %v363_v28 = vsel %vm362_vm12, %v659_v13, %v359_v26 }
 0x107   :  { %v368_v23 = vsel %vm365_vm13, %v367_v27, %v363_v28 }
 0x108   :  { %v369_v29 = vmul.f32 %v368_v23, %v344_v17 }
 0x10a   :  { %v644_v31 = vclamps-f32 %v369_v29, 1.0 }
 0x10c   :  { %v373_v32 = vadd.f32 1.0, %v644_v31 }
 0x10e   :  { %v375_v35 = vmul.f32 0.5, %v373_v32 }
 0x110   :  { %v389_v37 = vmul.f32 %v375_v35, %v772_v45  ;;  %v395_v41 = vmul.f32 %v375_v35, %v782_v54 }
 0x112   :  { %v818_v40 = vadd.f32 %v389_v37, %v387_v36 }
 0x114   :  { %v393_v19 = vmul.f32 %v818_v40, %v772_v45  ;;  %v825_v44 = vmul.f32 %v818_v40, %v818_v40 }
 0x116   :  { %v397_v42 = vadd.f32 %v395_v41, %v393_v19 }
 0x118   :  { %v401_v46 = vsub.f32 %v397_v42, %v825_v44 }
 0x11a   :  { %v828_v47 = vmax.f32 %v401_v46, 0.0 }
 0x11b   :  { %712 = dma.done.wait [#allocation3], 12416 }
 0x11c   :  { %713 = vsyncadd [#allocation3], 4294954880  ;;  %v422_v56 = vld [vmem:[#allocation2 + $0x78] sm:$0xff]  ;;  %v421_v16 = vld [vmem:[#allocation2 + $0x70] sm:$0xff] }
 0x11d   :  { %v438_v49 = vld [vmem:[#allocation2 + $0xf8] sm:$0xff]  ;;  %504 = vmatpush.msrb.mxu2 %v422_v56  ;;  %v437_v51 = vld [vmem:[#allocation2 + $0xf0] sm:$0xff]  ;;  %v420_v45 = vld [vmem:[#allocation2 + $0x68] sm:$0xff] }
 0x11e   :  { %524 = vmatpush.msrb.mxu3 %v438_v49  ;;  %v436_v52 = vld [vmem:[#allocation2 + $0xe8] sm:$0xff]  ;;  %v419_v54 = vld [vmem:[#allocation2 + $0x60] sm:$0xff]  ;;  %v418_v55 = vld [vmem:[#allocation2 + $0x58] sm:$0xff] }
 0x11f   :  { %505 = vmatpush.msrb.mxu2 %v421_v16  ;;  %v435_v53 = vld [vmem:[#allocation2 + $0xe0] sm:$0xff]  ;;  %v434_v57 = vld [vmem:[#allocation2 + $0xd8] sm:$0xff]  ;;  %v417_v58 = vld [vmem:[#allocation2 + $0x50] sm:$0xff] }
 0x120   :  { %525 = vmatpush.msrb.mxu3 %v437_v51  ;;  %v433_v59 = vld [vmem:[#allocation2 + $0xd0] sm:$0xff]  ;;  %v416_v60 = vld [vmem:[#allocation2 + $0x48] sm:$0xff]  ;;  %v454_v62 = vld [vmem:[#allocation2 + $0x178] sm:$0xff] }
 0x121   :  { %506 = vmatpush.msrb.mxu2 %v420_v45  ;;  %v432_v61 = vld [vmem:[#allocation2 + $0xc8] sm:$0xff]  ;;  %v415_v63 = vld [vmem:[#allocation2 + $0x40] sm:$0xff]  ;;  %546 = vmatpush.msra.mxu0 %v454_v62  ;;  %v470_v1 = vld [vmem:[#allocation2 + $0x1f8] sm:$0xff] }
 0x122   :  { %526 = vmatpush.msrb.mxu3 %v436_v52  ;;  %v431_v0 = vld [vmem:[#allocation2 + $0xc0] sm:$0xff]  ;;  %v453_v2 = vld [vmem:[#allocation2 + $0x170] sm:$0xff]  ;;  %v414_v50 = vld [vmem:[#allocation2 + $0x38] sm:$0xff]  ;;  %566 = vmatpush.msra.mxu1 %v470_v1 }
 0x123   :  { %507 = vmatpush.msrb.mxu2 %v419_v54  ;;  %v469_v3 = vld [vmem:[#allocation2 + $0x1f0] sm:$0xff]  ;;  %v430_v4 = vld [vmem:[#allocation2 + $0xb8] sm:$0xff]  ;;  %547 = vmatpush.msra.mxu0 %v453_v2  ;;  %v452_v5 = vld [vmem:[#allocation2 + $0x168] sm:$0xff] }
 0x124   :  { %527 = vmatpush.msrb.mxu3 %v435_v53  ;;  %v468_v6 = vld [vmem:[#allocation2 + $0x1e8] sm:$0xff]  ;;  %v451_v8 = vld [vmem:[#allocation2 + $0x160] sm:$0xff]  ;;  %v413_v9 = vld [vmem:[#allocation2 + $0x30] sm:$0xff]  ;;  %567 = vmatpush.msra.mxu1 %v469_v3 }
 0x125   :  { %508 = vmatpush.msrb.mxu2 %v418_v55  ;;  %v429_v10 = vld [vmem:[#allocation2 + $0xb0] sm:$0xff]  ;;  %548 = vmatpush.msra.mxu0 %v452_v5  ;;  %v467_v11 = vld [vmem:[#allocation2 + $0x1e0] sm:$0xff]  ;;  %v450_v12 = vld [vmem:[#allocation2 + $0x158] sm:$0xff] }
 0x126   :  { %528 = vmatpush.msrb.mxu3 %v434_v57  ;;  %v412_v48 = vld [vmem:[#allocation2 + $0x28] sm:$0xff]  ;;  %568 = vmatpush.msra.mxu1 %v468_v6  ;;  %v466_v14 = vld [vmem:[#allocation2 + $0x1d8] sm:$0xff]  ;;  %v449_v15 = vld [vmem:[#allocation2 + $0x150] sm:$0xff] }
 0x127   :  { %509 = vmatpush.msrb.mxu2 %v417_v58  ;;  %v428_v13 = vld [vmem:[#allocation2 + $0xa8] sm:$0xff]  ;;  %549 = vmatpush.msra.mxu0 %v451_v8  ;;  %v411_v18 = vld [vmem:[#allocation2 + $0x20] sm:$0xff]  ;;  %v465_v22 = vld [vmem:[#allocation2 + $0x1d0] sm:$0xff] }
 0x128   :  { %529 = vmatpush.msrb.mxu3 %v433_v59  ;;  %v427_v21 = vld [vmem:[#allocation2 + $0xa0] sm:$0xff]  ;;  %569 = vmatpush.msra.mxu1 %v467_v11  ;;  %v448_v24 = vld [vmem:[#allocation2 + $0x148] sm:$0xff]  ;;  %v410_v43 = vld [vmem:[#allocation2 + $0x18] sm:$0xff] }
 0x129   :  { %510 = vmatpush.msrb.mxu2 %v416_v60  ;;  %550 = vmatpush.msra.mxu0 %v450_v12  ;;  %v426_v25 = vld [vmem:[#allocation2 + $0x98] sm:$0xff]  ;;  %v464_v38 = vld [vmem:[#allocation2 + $0x1c8] sm:$0xff]  ;;  %v447_v26 = vld [vmem:[#allocation2 + $0x140] sm:$0xff] }
 0x12a   :  { %530 = vmatpush.msrb.mxu3 %v432_v61  ;;  %570 = vmatpush.msra.mxu1 %v466_v14  ;;  %v409_v27 = vld [vmem:[#allocation2 + $0x10] sm:$0xff]  ;;  %v463_v28 = vld [vmem:[#allocation2 + $0x1c0] sm:$0xff]  ;;  %v446_v23 = vld [vmem:[#allocation2 + $0x138] sm:$0xff] }
 0x12b   :  { %511 = vmatpush.msrb.mxu2 %v415_v63  ;;  %551 = vmatpush.msra.mxu0 %v449_v15  ;;  %v425_v17 = vld [vmem:[#allocation2 + $0x90] sm:$0xff]  ;;  %v408_v29 = vld [vmem:[#allocation2 + $0x8] sm:$0xff]  ;;  %v462_v31 = vld [vmem:[#allocation2 + $0x1b8] sm:$0xff] }
 0x12c   :  { %531 = vmatpush.msrb.mxu3 %v431_v0  ;;  %571 = vmatpush.msra.mxu1 %v465_v22  ;;  %v424_v30 = vld [vmem:[#allocation2 + $0x88] sm:$0xff]  ;;  %v445_v32 = vld [vmem:[#allocation2 + $0x130] sm:$0xff]  ;;  %v407_v33 = vld [vmem:[#allocation2] sm:$0xff]  ;;  %v544_v22 = vadd.f32 %v812_v20, %v809_v39 }
 0x12d   :  { %512 = vmatpush.msrb.mxu2 %v414_v50  ;;  %552 = vmatpush.msra.mxu0 %v448_v24  ;;  %v423_v34 = vld [vmem:[#allocation2 + $0x80] sm:$0xff]  ;;  %v486_v35 = vld [vmem:[#allocation2 + $0x278] sm:$0xff]  ;;  %v461_v37 = vld [vmem:[#allocation2 + $0x1b0] sm:$0xff] }
 0x12e   :  { %532 = vmatpush.msrb.mxu3 %v430_v4  ;;  %572 = vmatpush.msra.mxu1 %v464_v38  ;;  %v502_v36 = vld [vmem:[#allocation2 + $0x2f8] sm:$0xff]  ;;  %v485_v19 = vld [vmem:[#allocation2 + $0x270] sm:$0xff]  ;;  %v444_v42 = vld [vmem:[#allocation2 + $0x128] sm:$0xff] }
 0x12f   :  { %513 = vmatpush.msrb.mxu2 %v413_v9  ;;  %553 = vmatpush.msra.mxu0 %v447_v26  ;;  %v501_v41 = vld [vmem:[#allocation2 + $0x2f0] sm:$0xff]  ;;  %v460_v46 = vld [vmem:[#allocation2 + $0x1a8] sm:$0xff]  ;;  %v443_v49 = vld [vmem:[#allocation2 + $0x120] sm:$0xff]  ;;  %v626_v26 = vlaneseq }
 0x130   :  { %533 = vmatpush.msrb.mxu3 %v429_v10  ;;  %573 = vmatpush.msra.mxu1 %v463_v28  ;;  %v484_v56 = vld [vmem:[#allocation2 + $0x268] sm:$0xff]  ;;  %v483_v51 = vld [vmem:[#allocation2 + $0x260] sm:$0xff]  ;;  %v442_v54 = vld [vmem:[#allocation2 + $0x118] sm:$0xff] }
 0x131   :  { %514 = vmatpush.msrb.mxu2 %v412_v48  ;;  %554 = vmatpush.msra.mxu0 %v446_v23  ;;  %v500_v16 = vld [vmem:[#allocation2 + $0x2e8] sm:$0xff]  ;;  %v499_v45 = vld [vmem:[#allocation2 + $0x2e0] sm:$0xff]  ;;  %v482_v53 = vld [vmem:[#allocation2 + $0x258] sm:$0xff]  ;;  %vm628_vm14 = vcmp.lt.s32.totalorder %v626_v26, 128 }
 0x132   :  { %534 = vmatpush.msrb.mxu3 %v428_v13  ;;  %574 = vmatpush.msra.mxu1 %v462_v31  ;;  %v459_v52 = vld [vmem:[#allocation2 + $0x1a0] sm:$0xff]  ;;  %v498_v55 = vld [vmem:[#allocation2 + $0x2d8] sm:$0xff]  ;;  %v481_v58 = vld [vmem:[#allocation2 + $0x250] sm:$0xff] }
 0x133   :  { %515 = vmatpush.msrb.mxu2 %v411_v18  ;;  %555 = vmatpush.msra.mxu0 %v445_v32  ;;  %v458_v57 = vld [vmem:[#allocation2 + $0x198] sm:$0xff]  ;;  %v497_v59 = vld [vmem:[#allocation2 + $0x2d0] sm:$0xff]  ;;  %v440_v61 = vld [vmem:[#allocation2 + $0x108] sm:$0xff] }
 0x134   :  { %535 = vmatpush.msrb.mxu3 %v427_v21  ;;  %575 = vmatpush.msra.mxu1 %v461_v37  ;;  %v457_v60 = vld [vmem:[#allocation2 + $0x190] sm:$0xff]  ;;  %v480_v62 = vld [vmem:[#allocation2 + $0x248] sm:$0xff]  ;;  %v439_v0 = vld [vmem:[#allocation2 + $0x100] sm:$0xff] }
 0x135   :  { %516 = vmatpush.msrb.mxu2 %v410_v43  ;;  %556 = vmatpush.msra.mxu0 %v444_v42  ;;  %v496_v63 = vld [vmem:[#allocation2 + $0x2c8] sm:$0xff]  ;;  %v479_v1 = vld [vmem:[#allocation2 + $0x240] sm:$0xff]  ;;  %v478_v50 = vld [vmem:[#allocation2 + $0x238] sm:$0xff]  ;;  %v545_v43 = vadd.f32 %v828_v47, %v825_v44 }
 0x136   :  { %536 = vmatpush.msrb.mxu3 %v426_v25  ;;  %576 = vmatpush.msra.mxu1 %v460_v46  ;;  %v495_v2 = vld [vmem:[#allocation2 + $0x2c0] sm:$0xff]  ;;  %v494_v4 = vld [vmem:[#allocation2 + $0x2b8] sm:$0xff]  ;;  %v477_v5 = vld [vmem:[#allocation2 + $0x230] sm:$0xff] }
 0x137   :  { %517 = vmatpush.msrb.mxu2 %v409_v27  ;;  %557 = vmatpush.msra.mxu0 %v443_v49  ;;  %v455_v3 = vld [vmem:[#allocation2 + $0x180] sm:$0xff]  ;;  %v493_v6 = vld [vmem:[#allocation2 + $0x2b0] sm:$0xff]  ;;  %v476_v8 = vld [vmem:[#allocation2 + $0x228] sm:$0xff] }
 0x138   :  { %537 = vmatpush.msrb.mxu3 %v425_v17  ;;  %577 = vmatpush.msra.mxu1 %v459_v52  ;;  %v492_v9 = vld [vmem:[#allocation2 + $0x2a8] sm:$0xff]  ;;  %v475_v10 = vld [vmem:[#allocation2 + $0x220] sm:$0xff]  ;;  %v474_v12 = vld [vmem:[#allocation2 + $0x218] sm:$0xff] }
 0x139   :  { %518 = vmatpush.msrb.mxu2 %v408_v29  ;;  %558 = vmatpush.msra.mxu0 %v442_v54  ;;  %v491_v11 = vld [vmem:[#allocation2 + $0x2a0] sm:$0xff]  ;;  %v490_v48 = vld [vmem:[#allocation2 + $0x298] sm:$0xff]  ;;  %v473_v13 = vld [vmem:[#allocation2 + $0x210] sm:$0xff] }
 0x13a   :  { %538 = vmatpush.msrb.mxu3 %v424_v30  ;;  %578 = vmatpush.msra.mxu1 %v458_v57  ;;  %v489_v14 = vld [vmem:[#allocation2 + $0x290] sm:$0xff]  ;;  %v472_v15 = vld [vmem:[#allocation2 + $0x208] sm:$0xff]  ;;  %v471_v21 = vld [vmem:[#allocation2 + $0x200] sm:$0xff] }
 0x13b   :  { %519 = vmatpush.msrb.mxu2 %v407_v33  ;;  %v488_v18 = vld [vmem:[#allocation2 + $0x288] sm:$0xff]  ;;  %v487_v24 = vld [vmem:[#allocation2 + $0x280] sm:$0xff] }
 0x13c   :  { %539 = vmatpush.msrb.mxu3 %v423_v34  ;;  %520 = vmatmul.f32.vlgmr.msrb.gmra.mxu2 %v802_v7  ;;  %v441_v7 = vld [vmem:[#allocation2 + $0x110] sm:$0xff]  ;;  %v503_v25 = vld [vmem:[#allocation2 + $0x300] sm:$0x1] }
 0x13d   :  { %586 = vmatpush.msra.mxu2 %v486_v35  ;;  %540 = vmatmul.f32.vlgmr.msrb.gmra.mxu3 %v818_v40  ;;  %v456_v40 = vld [vmem:[#allocation2 + $0x188] sm:$0xff] }
 0x13e   :  { %606 = vmatpush.msra.mxu3 %v502_v36  ;;  %559 = vmatpush.msra.mxu0 %v441_v7 }
 0x13f   :  { %587 = vmatpush.msra.mxu2 %v485_v19  ;;  %579 = vmatpush.msra.mxu1 %v457_v60 }
 0x140   :  { %607 = vmatpush.msra.mxu3 %v501_v41  ;;  %560 = vmatpush.msra.mxu0 %v440_v61 }
 0x141   :  { %588 = vmatpush.msra.mxu2 %v484_v56  ;;  %580 = vmatpush.msra.mxu1 %v456_v40 }
 0x142   :  { %608 = vmatpush.msra.mxu3 %v500_v16  ;;  %561 = vmatpush.msra.mxu0 %v439_v0 }
 0x143   :  { %589 = vmatpush.msra.mxu2 %v483_v51  ;;  %581 = vmatpush.msra.mxu1 %v455_v3 }
 0x144   :  { %609 = vmatpush.msra.mxu3 %v499_v45  ;;  %562 = vmatmul.f32.vlgmr.msra.gmra.mxu0 %v812_v20 }
 0x145   :  { %590 = vmatpush.msra.mxu2 %v482_v53  ;;  %582 = vmatmul.f32.vlgmr.msra.gmra.mxu1 %v828_v47 }
 0x146   :  { %610 = vmatpush.msra.mxu3 %v498_v55 }
 0x147   :  { %591 = vmatpush.msra.mxu2 %v481_v58 }
 0x148   :  { %611 = vmatpush.msra.mxu3 %v497_v59 }
 0x149   :  { %592 = vmatpush.msra.mxu2 %v480_v62 }
 0x14a   :  { %612 = vmatpush.msra.mxu3 %v496_v63 }
 0x14b   :  { %593 = vmatpush.msra.mxu2 %v479_v1 }
 0x14c   :  { %613 = vmatpush.msra.mxu3 %v495_v2 }
 0x14d   :  { %594 = vmatpush.msra.mxu2 %v478_v50 }
 0x14e   :  { %614 = vmatpush.msra.mxu3 %v494_v4 }
 0x14f   :  { %595 = vmatpush.msra.mxu2 %v477_v5 }
 0x150   :  { %615 = vmatpush.msra.mxu3 %v493_v6 }
 0x151   :  { %596 = vmatpush.msra.mxu2 %v476_v8 }
 0x152   :  { %616 = vmatpush.msra.mxu3 %v492_v9 }
 0x153   :  { %597 = vmatpush.msra.mxu2 %v475_v10 }
 0x154   :  { %617 = vmatpush.msra.mxu3 %v491_v11 }
 0x155   :  { %598 = vmatpush.msra.mxu2 %v474_v12 }
 0x156   :  { %618 = vmatpush.msra.mxu3 %v490_v48 }
 0x157   :  { %599 = vmatpush.msra.mxu2 %v473_v13 }
 0x158   :  { %619 = vmatpush.msra.mxu3 %v489_v14 }
 0x159   :  { %600 = vmatpush.msra.mxu2 %v472_v15 }
 0x15a   :  { %620 = vmatpush.msra.mxu3 %v488_v18 }
 0x15b   :  { %601 = vmatpush.msra.mxu2 %v471_v21 }
 0x15c   :  { %621 = vmatpush.msra.mxu3 %v487_v24  ;;  %602 = vmatmul.f32.vlgmr.msra.gmra.mxu2 %v544_v22 }
 0x15d   :  { %622 = vmatmul.f32.vlgmr.msra.gmra.mxu3 %v545_v43 }
 0x1bf   :  { %v521_v38 = vpop.f32.mrf.mxu2 }
 0x1c0   :  { %v522_v27 = vadd.f32 %v521_v38, %v503_v25  ;;  %v541_v17 = vpop.f32.mrf.mxu3 }
 0x1c1   :  { %v563_v39 = vpop.f32.mrf.mxu0 }
 0x1c2   :  { %v542_v28 = vadd.f32 %v541_v17, %v522_v27  ;;  %v583_v20 = vpop.f32.mrf.mxu1 }
 0x1c3   :  { %v584_v44 = vadd.f32 %v583_v20, %v563_v39 }
 0x1c4   :  { %630 = vst.msk [vmem:[%s847_s3] sm:$0x1] %vm628_vm14, %v542_v28 }
 0x1df   :  { %v603_v47 = vpop.f32.mrf.mxu2 }
 0x1e0   :  { %v623_v23 = vpop.f32.mrf.mxu3  ;;  %v604_v29 = vadd.f32 %v603_v47, %v584_v44 }
 0x1e2   :  { %v624_v30 = vadd.f32 %v623_v23, %v604_v29 }
 0x1e4   :  { %631 = vst.msk [vmem:[%s847_s3 + $0x1] sm:$0x1] %vm628_vm14, %v624_v30 }
 0x1e5   :  { %636 = vsyncpa [#allocation5], 1 }
 0x1e6   :  { %637 = vsyncmov [#allocation3] }
 0x1e9   :  { %s638_s29 = vpop.sfrf %637 }
 0x1ea   :  { %p645_p0 = scmp.ne.s32.totalorder %s638_s29, 0 }
 0x1ec   :  { %642 = shalt.err (%p645_p0)  }

</bundles_post_ra>
